<compile_context>
chip_gen: v7x
topology: tpu7x:2x2x1
jax: 0.10.0
libtpu: 0.0.40
codegen_flags: <defaults>
</compile_context>

<pallas_src>
import functools

import jax
import jax.numpy as jnp
from jax.experimental import pallas as pl
from jax.experimental.pallas import tpu as pltpu


def _round_up(x, m):
    return ((x + m - 1) // m) * m


def _round_down(x, m):
    return (x // m) * m


def _lora_soup_kernel(alpha_ref, w_ref, deltas_ref, out_ref, *, num_heads):
    # alpha_ref : (H,)         f32, SMEM (already softmax-normalized)
    # w_ref     : (TO, TI)     native dtype, VMEM
    # deltas_ref: (H, TO, TI)  native dtype, VMEM
    # out_ref   : (TO, TI)     native dtype, VMEM
    acc = w_ref[...].astype(jnp.float32)
    # H is small and static -> unrolled weighted accumulation on the VPU,
    # with the per-head weight read as a scalar from SMEM (scalar broadcast).
    for h in range(num_heads):
        acc = acc + alpha_ref[h] * deltas_ref[h].astype(jnp.float32)
    out_ref[...] = acc.astype(out_ref.dtype)


def _vmem_capacity_bytes():
    try:
        return int(pltpu.get_tpu_info().vmem_capacity_bytes)
    except Exception:
        return 64 * 1024 * 1024  # conservative (v7x per-TC) fallback


def lora_soup_apply(W, deltas, alpha, *, tile_o=None, tile_i=None):
    """W' = W + sum_h softmax(alpha)[h] * deltas[h]  via a Pallas TPU kernel."""
    H, out_f, in_f = deltas.shape
    assert W.shape == (out_f, in_f)
    assert alpha.shape == (H,)

    # --- softmax over H hoisted out of the per-tile body --------------------
    alpha_w = jax.nn.softmax(alpha.astype(jnp.float32), axis=0)  # (H,)

    itemsize = jnp.dtype(W.dtype).itemsize
    d_bytes = jnp.dtype(deltas.dtype).itemsize
    # sublane packing: f32 -> 8 rows / vreg, bf16 -> 16, int8/fp8 -> 32
    sub = 8 * max(1, 4 // itemsize)

    # --- device-aware VMEM budget -------------------------------------------
    # Target double-buffered working set: ~70% of physical VMEM per core
    # (~45 MiB on v7x's 64 MiB, ~90 MiB on v5e/v6e's 128 MiB), capped at
    # 96 MiB; headroom absorbs Mosaic internal scratch.
    vmem_cap = _vmem_capacity_bytes()
    budget = min(int(vmem_cap * 0.70), 96 * 1024 * 1024)
    # Bytes moved per grid step per element: W tile + out tile + H delta tiles.
    bpe = 2 * itemsize + H * d_bytes

    # --- tile selection ------------------------------------------------------
    # Prefer full-row tiles (one contiguous HBM slab per DMA, unmasked lane-
    # dense stores); shrink tile_o first to fit the budget.  Because bpe
    # includes H, the footprint stays bounded for any head count.
    if tile_i is None:
        ti = in_f  # full lane extent (allowed even when not 128-aligned)
    else:
        ti = max(128, _round_down(int(tile_i), 128))
        if ti >= in_f:
            ti = in_f

    # rows such that 2 buffers * 1.3 fudge * rows * ti * bpe <= budget
    if tile_o is None:
        to = max(sub, _round_down(int(budget // (2.6 * ti * bpe)), sub))
    else:
        to = max(sub, _round_down(int(tile_o), sub))
    if to >= out_f:
        to = out_f  # full extent -> always a legal block shape

    # Extreme H / row width: even the thinnest full-row tile blows the budget,
    # so fall back to a narrower, 128-aligned column tile.
    if tile_i is None and 2.6 * to * ti * bpe > budget:
        ti = max(128, _round_down(int(budget // (2.6 * to * bpe)), 128))
        if ti >= in_f:
            ti = in_f

    grid = (pl.cdiv(out_f, to), pl.cdiv(in_f, ti))

    # --- VMEM limit: double-buffered (W + out + H*deltas) tiles --------------
    per_step = to * ti * bpe
    # Keep the explicit 32 MiB floor: v5e's default scoped-VMEM limit is only
    # 16 MiB, smaller than typical double-buffered footprints for this kernel.
    vmem_limit = max(int(2.6 * per_step), 32 * 1024 * 1024)
    vmem_limit = min(vmem_limit, vmem_cap)  # never request beyond physical

    kernel = functools.partial(_lora_soup_kernel, num_heads=H)

    # TODO(synk): if xprof shows inter-step DMA bubbles on v7x, add
    # pipeline_mode=pl.Buffered(3) on the W/deltas specs (re-check the budget).
    out = pl.pallas_call(
        kernel,
        out_shape=jax.ShapeDtypeStruct((out_f, in_f), W.dtype),
        grid_spec=pltpu.PrefetchScalarGridSpec(
            num_scalar_prefetch=0,
            grid=grid,
            in_specs=[
                # softmaxed alpha: whole (H,) vector in SMEM, read as scalars
                pl.BlockSpec(memory_space=pltpu.MemorySpace.SMEM),
                pl.BlockSpec((to, ti), lambda i, j: (i, j)),            # W
                pl.BlockSpec((H, to, ti), lambda i, j: (0, i, j)),      # deltas
            ],
            out_specs=pl.BlockSpec((to, ti), lambda i, j: (i, j)),
        ),
        compiler_params=pltpu.CompilerParams(
            dimension_semantics=("parallel", "parallel"),
            vmem_limit_bytes=vmem_limit,
        ),
    )(alpha_w, W, deltas)
    return out


def lora_soup_ref(W, deltas, alpha):
    a = jax.nn.softmax(alpha.astype(jnp.float32), axis=0)
    delta = jnp.einsum("h,hod->od", a, deltas.astype(jnp.float32))
    return (W.astype(jnp.float32) + delta).astype(W.dtype)


if __name__ == "__main__":
    key = jax.random.PRNGKey(0)
    k_w, k_d, k_a = jax.random.split(key, 3)

    # --- Test 1: small, aligned, f32 (module-consistent shapes) --------------
    H, out_features, in_features = 4, 64, 256
    W = jax.random.normal(k_w, (out_features, in_features), dtype=jnp.float32)
    deltas = 0.05 * jax.random.normal(
        k_d, (H, out_features, in_features), dtype=jnp.float32
    )
    # 'learnable' mode initializes alpha to zeros; use random alpha so the
    # softmax weighting is non-trivial.
    alpha = jax.random.normal(k_a, (H,), dtype=jnp.float32)

    out = jax.block_until_ready(lora_soup_apply(W, deltas, alpha))
    ref = lora_soup_ref(W, deltas, alpha)
    assert out.shape == (out_features, in_features)
    assert jnp.allclose(out, ref, atol=1e-5, rtol=1e-5), "mismatch (aligned f32)"

    # --- Test 2: non-divisible shape, auto full-extent tiles (no padding) ----
    o2, i2 = 72, 200
    W2 = jax.random.normal(k_w, (o2, i2), dtype=jnp.float32)
    d2 = 0.05 * jax.random.normal(k_d, (H, o2, i2), dtype=jnp.float32)
    out2 = jax.block_until_ready(lora_soup_apply(W2, d2, alpha))
    ref2 = lora_soup_ref(W2, d2, alpha)
    assert out2.shape == (o2, i2)
    assert jnp.allclose(out2, ref2, atol=1e-5, rtol=1e-5), "mismatch (ragged f32)"

    # --- Test 3: non-divisible shape with small explicit tiles -> multi-step
    # cdiv grid with ragged edge blocks in BOTH dims (OOB writes dropped). ----
    out3 = jax.block_until_ready(lora_soup_apply(W2, d2, alpha, tile_o=16, tile_i=128))
    assert jnp.allclose(out3, ref2, atol=1e-5, rtol=1e-5), "mismatch (ragged tiles)"

    # --- Test 4: divisible shape with small explicit tiles -> exact grid -----
    o4, i4 = 64, 512
    W4 = jax.random.normal(k_w, (o4, i4), dtype=jnp.float32)
    d4 = 0.05 * jax.random.normal(k_d, (H, o4, i4), dtype=jnp.float32)
    out4 = jax.block_until_ready(lora_soup_apply(W4, d4, alpha, tile_o=16, tile_i=128))
    ref4 = lora_soup_ref(W4, d4, alpha)
    assert jnp.allclose(out4, ref4, atol=1e-5, rtol=1e-5), "mismatch (multi-tile)"

    # --- Test 5: bf16 weights/deltas kept native (half the HBM traffic) ------
    Wb = W.astype(jnp.bfloat16)
    db = deltas.astype(jnp.bfloat16)
    outb = jax.block_until_ready(lora_soup_apply(Wb, db, alpha))
    refb = lora_soup_ref(Wb, db, alpha)
    assert outb.dtype == jnp.bfloat16
    assert jnp.allclose(
        outb.astype(jnp.float32), refb.astype(jnp.float32), atol=2e-2, rtol=2e-2
    ), "mismatch (bf16)"

    print("KERNEL_OK")
</pallas_src>

<mosaic_0001>
module attributes {stable_mosaic.version = 11 : i64} {
  func.func @_lora_soup_kernel(%arg0: i32, %arg1: i32, %arg2: memref<4xf32, #tpu.memory_space<smem>>, %arg3: memref<64x256xf32, #tpu.memory_space<vmem>>, %arg4: memref<4x64x256xf32, #tpu.memory_space<vmem>>, %arg5: memref<64x256xf32, #tpu.memory_space<vmem>>) attributes {dimension_semantics = [#tpu.dimension_semantics<parallel>, #tpu.dimension_semantics<parallel>], iteration_bounds = array<i64: 1, 1>, scalar_prefetch = 0 : i64, scratch_operands = 0 : i64, tpu.core_type = #tpu.core_type<tc>, window_params = [{transform_indices = @transform_0, window_bounds = array<i64: 4>}, {transform_indices = @transform_1, window_bounds = array<i64: 64, 256>}, {transform_indices = @transform_2, window_bounds = array<i64: 4, 64, 256>}, {transform_indices = @transform_3, window_bounds = array<i64: 64, 256>}]} {
    %c0 = arith.constant 0 : index
    %c0_0 = arith.constant 0 : index
    %0 = vector.load %arg3[%c0, %c0_0] : memref<64x256xf32, #tpu.memory_space<vmem>>, vector<64x256xf32>
    %c0_1 = arith.constant 0 : index
    %1 = memref.load %arg2[%c0_1] : memref<4xf32, #tpu.memory_space<smem>>
    %c0_2 = arith.constant 0 : index
    %c0_3 = arith.constant 0 : index
    %c0_4 = arith.constant 0 : index
    %2 = vector.load %arg4[%c0_2, %c0_3, %c0_4] : memref<4x64x256xf32, #tpu.memory_space<vmem>>, vector<1x64x256xf32>
    %3 = vector.shape_cast %2 : vector<1x64x256xf32> to vector<64x256xf32>
    %4 = vector.broadcast %1 : f32 to vector<64x256xf32>
    %5 = arith.mulf %4, %3 : vector<64x256xf32>
    %6 = arith.addf %0, %5 : vector<64x256xf32>
    %c1 = arith.constant 1 : index
    %7 = memref.load %arg2[%c1] : memref<4xf32, #tpu.memory_space<smem>>
    %c1_5 = arith.constant 1 : index
    %c0_6 = arith.constant 0 : index
    %c0_7 = arith.constant 0 : index
    %8 = vector.load %arg4[%c1_5, %c0_6, %c0_7] : memref<4x64x256xf32, #tpu.memory_space<vmem>>, vector<1x64x256xf32>
    %9 = vector.shape_cast %8 : vector<1x64x256xf32> to vector<64x256xf32>
    %10 = vector.broadcast %7 : f32 to vector<64x256xf32>
    %11 = arith.mulf %10, %9 : vector<64x256xf32>
    %12 = arith.addf %6, %11 : vector<64x256xf32>
    %c2 = arith.constant 2 : index
    %13 = memref.load %arg2[%c2] : memref<4xf32, #tpu.memory_space<smem>>
    %c2_8 = arith.constant 2 : index
    %c0_9 = arith.constant 0 : index
    %c0_10 = arith.constant 0 : index
    %14 = vector.load %arg4[%c2_8, %c0_9, %c0_10] : memref<4x64x256xf32, #tpu.memory_space<vmem>>, vector<1x64x256xf32>
    %15 = vector.shape_cast %14 : vector<1x64x256xf32> to vector<64x256xf32>
    %16 = vector.broadcast %13 : f32 to vector<64x256xf32>
    %17 = arith.mulf %16, %15 : vector<64x256xf32>
    %18 = arith.addf %12, %17 : vector<64x256xf32>
    %c3 = arith.constant 3 : index
    %19 = memref.load %arg2[%c3] : memref<4xf32, #tpu.memory_space<smem>>
    %c3_11 = arith.constant 3 : index
    %c0_12 = arith.constant 0 : index
    %c0_13 = arith.constant 0 : index
    %20 = vector.load %arg4[%c3_11, %c0_12, %c0_13] : memref<4x64x256xf32, #tpu.memory_space<vmem>>, vector<1x64x256xf32>
    %21 = vector.shape_cast %20 : vector<1x64x256xf32> to vector<64x256xf32>
    %22 = vector.broadcast %19 : f32 to vector<64x256xf32>
    %23 = arith.mulf %22, %21 : vector<64x256xf32>
    %24 = arith.addf %18, %23 : vector<64x256xf32>
    %c0_14 = arith.constant 0 : index
    %c0_15 = arith.constant 0 : index
    %25 = vector.load %arg5[%c0_14, %c0_15] : memref<64x256xf32, #tpu.memory_space<vmem>>, vector<64x256xf32>
    tpu.vector_store %arg5[%c0_14, %c0_15], %24 {strides = array<i32>} : memref<64x256xf32, #tpu.memory_space<vmem>>, vector<64x256xf32>,
    return
  }
  func.func @transform_0(%arg0: i32, %arg1: i32) -> i32 {
    %c0_i32 = arith.constant 0 : i32
    %c0_i32_0 = arith.constant 0 : i32
    return %c0_i32 : i32
  }
  func.func @transform_1(%arg0: i32, %arg1: i32) -> (i32, i32) {
    %c0_i32 = arith.constant 0 : i32
    return %arg0, %arg1 : i32, i32
  }
  func.func @transform_2(%arg0: i32, %arg1: i32) -> (i32, i32, i32) {
    %c0_i32 = arith.constant 0 : i32
    %c0_i32_0 = arith.constant 0 : i32
    return %c0_i32, %arg0, %arg1 : i32, i32, i32
  }
  func.func @transform_3(%arg0: i32, %arg1: i32) -> (i32, i32) {
    %c0_i32 = arith.constant 0 : i32
    return %arg0, %arg1 : i32, i32
  }
}

</mosaic_0001>

<bundles_post_ra>
// kernel: tpu_custom_call.1
= control target key start
LH: loop header
LB: loop body
LE: loop exit
PB: predicated region body
PF: predicated region fallthrough
CT: control target
= control target key end

     0   :  { %8 = vsyncpa [#allocation5], 0  ;;  %s556_s0 = inlined_call_operand.hbm [shape: f32[4], index: 0, kind: input, shape index: {}]   ;;  %s557_s1 = inlined_call_operand.hbm [shape: f32[64,256], index: 1, kind: input, shape index: {}]   ;;  %s558_s2 = inlined_call_operand.hbm [shape: f32[4,64,256], index: 2, kind: input, shape index: {}]   ;;  %s559_s3 = inlined_call_operand.hbm [shape: f32[64,256], index: 3, kind: output, shape index: {}]  }
   0x1   :  { %9 = vsyncpa [#allocation3], 0 }
   0x2   :  { %10 = vsyncpa [#allocation8], 0 }
   0x3   :  { %11 = vsyncpa [#allocation4], 0  ;;  %s317_s14 = scalar_lea.hbm %s556_s0, 16 }
   0x4   :  { %p318_p0 = scmp.ne.s32.totalorder %s556_s0, %s317_s14  ;;  %p321_p1 = scmp.lt.u32.totalorder %s317_s14, %s556_s0 }
   0x6   :  { %p323_p2 = pnand %p321_p1, %p318_p0 }
   0x8   :  { %326 = shalt.err (!%p323_p2)
}
   0x9   :  { %s401_s19 = smov [#allocation2]   ;;  %s402_s22 = smov [#allocation6]  }
   0xa   :  { %19 = dma.hbm_to_smem %s556_s0, 16, %s401_s19, [#allocation5]  }
   0xb   :  { %s25_s23 = sshll.u32 %s402_s22, 4  ;;  %s327_s26 = scalar_lea.hbm %s557_s1, 2048  ;;  %s26_s23 = int_to_ptr.vmem [resolvable:$true] %s25_s23 }
   0xc   :  { %p328_p3 = scmp.ne.s32.totalorder %s557_s1, %s327_s26  ;;  %p331_p4 = scmp.lt.u32.totalorder %s327_s26, %s557_s1 }
   0xe   :  { %p333_p5 = pnand %p331_p4, %p328_p3 }
  0x10   :  { %336 = shalt.err (!%p333_p5)
}
  0x11   :  { %s337_s4 = scalar_lea.vmem %s26_s23, 2048  ;;  %p342_p7 = scmp.lt.s32.totalorder %s26_s23, %s26_s23 }
  0x12   :  { %p338_p6 = scmp.ne.s32.totalorder %s26_s23, %s337_s4  ;;  %p343_p8 = scmp.lt.s32.totalorder %s337_s4, %s337_s4 }
  0x14   :  { %p344_p9 = por %p343_p8, %p342_p7 }
  0x16   :  { %p345_p10 = pnand %p344_p9, %p338_p6 }
  0x18   :  { %348 = shalt.err (!%p345_p10)
}
  0x19   :  { %s403_s0 = smov 256   ;;  %s404_s5 = smov 16  }
  0x1a   :  { %31 = dma.hbm_to_vmem [thread:$0]  %s557_s1, 2048, %s26_s23, [#allocation3], %s403_s0, %s403_s0, %s404_s5  }
  0x1b   :  { %s405_s8 = smov [#allocation7]   ;;  %s349_s12 = scalar_lea.hbm %s558_s2, 8192 }
  0x1c   :  { %s37_s9 = sshll.u32 %s405_s8, 4  ;;  %p350_p11 = scmp.ne.s32.totalorder %s558_s2, %s349_s12  ;;  %s38_s9 = int_to_ptr.vmem [resolvable:$true] %s37_s9 }
  0x1d   :  { %p353_p12 = scmp.lt.u32.totalorder %s349_s12, %s558_s2 }
  0x1f   :  { %p355_p13 = pnand %p353_p12, %p350_p11 }
  0x21   :  { %358 = shalt.err (!%p355_p13)
}
  0x22   :  { %s359_s17 = scalar_lea.vmem %s38_s9, 8192  ;;  %p364_p1 = scmp.lt.s32.totalorder %s38_s9, %s38_s9 }
  0x23   :  { %p360_p0 = scmp.ne.s32.totalorder %s38_s9, %s359_s17  ;;  %p365_p2 = scmp.lt.s32.totalorder %s359_s17, %s359_s17 }
  0x25   :  { %p366_p3 = por %p365_p2, %p364_p1 }
  0x27   :  { %p367_p4 = pnand %p366_p3, %p360_p0 }
  0x29   :  { %370 = shalt.err (!%p367_p4)
}
  0x2a   :  { %43 = dma.hbm_to_vmem [thread:$0]  %s558_s2, 8192, %s38_s9, [#allocation8], %s403_s0, %s403_s0, %s404_s5  }
  0x2b   :  { %393 = dma.done.wait [#allocation5], 16  }
  0x2c   :  { %394 = vsyncadd [#allocation5], 4294967280 }
  0x2d   :  { %395 = dma.done.wait [#allocation3], 2048  }
  0x2e   :  { %396 = vsyncadd [#allocation3], 4294965248 }
  0x2f   :  { %397 = dma.done.wait [#allocation8], 8192  }
  0x30   :  { %398 = vsyncadd [#allocation8], 4294959104 }
  0x31   :  { %53 = sfence }
  0x32   :  { %s70_s19 = sld [smem:[#allocation2]]  ;;  %s308_s20 = sld [smem:[#allocation2 + $0x1]]  ;;  %v54_v0 = vld [vmem:[#allocation6] sm:$0xff]  ;;  %v72_v5 = vld [vmem:[#allocation7 + $0x8] sm:$0xff]  ;;  %v73_v11 = vld [vmem:[#allocation7 + $0x10] sm:$0xff] }
  0x33   :  { %s309_s21 = sld [smem:[#allocation2 + $0x2]]  ;;  %s310_s22 = sld [smem:[#allocation2 + $0x3]]  ;;  %v71_v1 = vld [vmem:[#allocation7] sm:$0xff]  ;;  %v123_v6 = vld [vmem:[#allocation7 + $0x88] sm:$0xff]  ;;  %v124_v17 = vld [vmem:[#allocation7 + $0x90] sm:$0xff] }
  0x34   :  { %v122_v2 = vld [vmem:[#allocation7 + $0x80] sm:$0xff]  ;;  %v55_v9 = vld [vmem:[#allocation6 + $0x8] sm:$0xff]  ;;  %v175_v18 = vld [vmem:[#allocation7 + $0x110] sm:$0xff]  ;;  %s406_s2 = smov [#allocation9]  }
  0x35   :  { %v173_v3 = vld [vmem:[#allocation7 + $0x100] sm:$0xff]  ;;  %v174_v10 = vld [vmem:[#allocation7 + $0x108] sm:$0xff]  ;;  %v56_v22 = vld [vmem:[#allocation6 + $0x10] sm:$0xff]  ;;  %s294_s23 = sshll.u32 %s406_s2, 4  ;;  %s295_s23 = int_to_ptr.vmem [resolvable:$true] %s294_s23 }
  0x36   :  { %v224_v4 = vld [vmem:[#allocation7 + $0x180] sm:$0xff]  ;;  %v225_v16 = vld [vmem:[#allocation7 + $0x188] sm:$0xff]  ;;  %v74_v23 = vld [vmem:[#allocation7 + $0x18] sm:$0xff]  ;;  %s371_s24 = scalar_lea.vmem %s295_s23, 2048  ;;  %p376_p6 = scmp.lt.s32.totalorder %s295_s23, %s295_s23 }
  0x37   :  { %v125_v24 = vld [vmem:[#allocation7 + $0x98] sm:$0xff]  ;;  %v226_v29 = vld [vmem:[#allocation7 + $0x190] sm:$0xff]  ;;  %v75_v31 = vld [vmem:[#allocation7 + $0x20] sm:$0xff]  ;;  %p372_p5 = scmp.ne.s32.totalorder %s295_s23, %s371_s24  ;;  %p377_p7 = scmp.lt.s32.totalorder %s371_s24, %s371_s24 }
  0x38   :  { %v469_v7 = vstv %s70_s19  ;;  %v471_v8 = vstv %s308_s20  ;;  %v176_v30 = vld [vmem:[#allocation7 + $0x118] sm:$0xff]  ;;  %v126_v37 = vld [vmem:[#allocation7 + $0xa0] sm:$0xff]  ;;  %v76_v49 = vld [vmem:[#allocation7 + $0x28] sm:$0xff] }
  0x39   :  { %v88_v12 = vmul.f32 %v469_v7, %v71_v1  ;;  %v139_v13 = vmul.f32 %v471_v8, %v122_v2  ;;  %v475_v14 = vstv %s309_s21  ;;  %v477_v15 = vstv %s310_s22  ;;  %v57_v36 = vld [vmem:[#allocation6 + $0x18] sm:$0xff]  ;;  %v58_v43 = vld [vmem:[#allocation6 + $0x20] sm:$0xff]  ;;  %v127_v55 = vld [vmem:[#allocation7 + $0xa8] sm:$0xff]  ;;  %p378_p8 = por %p377_p7, %p376_p6 }
  0x3a   :  { %v190_v19 = vmul.f32 %v475_v14, %v173_v3  ;;  %v89_v20 = vmul.f32 %v469_v7, %v72_v5  ;;  %v140_v21 = vmul.f32 %v471_v8, %v123_v6  ;;  %v241_v26 = vmul.f32 %v477_v15, %v224_v4  ;;  %v227_v42 = vld [vmem:[#allocation7 + $0x198] sm:$0xff]  ;;  %v177_v44 = vld [vmem:[#allocation7 + $0x120] sm:$0xff]  ;;  %v59_v60 = vld [vmem:[#allocation6 + $0x28] sm:$0xff] }
  0x3b   :  { %v104_v25 = vadd.f32 %v88_v12, %v54_v0  ;;  %v191_v27 = vmul.f32 %v475_v14, %v174_v10  ;;  %v90_v28 = vmul.f32 %v469_v7, %v73_v11  ;;  %v242_v33 = vmul.f32 %v477_v15, %v225_v16  ;;  %v228_v54 = vld [vmem:[#allocation7 + $0x1a0] sm:$0xff]  ;;  %v178_v61 = vld [vmem:[#allocation7 + $0x128] sm:$0xff]  ;;  %v77_v3 = vld [vmem:[#allocation7 + $0x30] sm:$0xff]  ;;  %p379_p9 = pnand %p378_p8, %p372_p5 }
  0x3c   :  { %v105_v32 = vadd.f32 %v89_v20, %v55_v9  ;;  %v141_v34 = vmul.f32 %v471_v8, %v124_v17  ;;  %v192_v35 = vmul.f32 %v475_v14, %v175_v18  ;;  %v91_v40 = vmul.f32 %v469_v7, %v74_v23  ;;  %v229_v2 = vld [vmem:[#allocation7 + $0x1a8] sm:$0xff]  ;;  %v128_v4 = vld [vmem:[#allocation7 + $0xb0] sm:$0xff]  ;;  %v78_v12 = vld [vmem:[#allocation7 + $0x38] sm:$0xff] }
  0x3d   :  { %v155_v38 = vadd.f32 %v139_v13, %v104_v25  ;;  %v106_v39 = vadd.f32 %v90_v28, %v56_v22  ;;  %v142_v41 = vmul.f32 %v471_v8, %v125_v24  ;;  %v243_v46 = vmul.f32 %v477_v15, %v226_v29  ;;  %v179_v11 = vld [vmem:[#allocation7 + $0x130] sm:$0xff]  ;;  %v79_v28 = vld [vmem:[#allocation7 + $0x40] sm:$0xff] }
  0x3e   :  { %v156_v45 = vadd.f32 %v140_v21, %v105_v32  ;;  %v193_v47 = vmul.f32 %v475_v14, %v176_v30  ;;  %v92_v48 = vmul.f32 %v469_v7, %v75_v31  ;;  %v107_v52 = vadd.f32 %v91_v40, %v57_v36  ;;  %v230_v20 = vld [vmem:[#allocation7 + $0x1b0] sm:$0xff]  ;;  %v129_v21 = vld [vmem:[#allocation7 + $0xb8] sm:$0xff]  ;;  %v62_v40 = vld [vmem:[#allocation6 + $0x40] sm:$0xff] }
  0x3f   :  { %v206_v50 = vadd.f32 %v190_v19, %v155_v38  ;;  %v157_v51 = vadd.f32 %v141_v34, %v106_v39  ;;  %v143_v53 = vmul.f32 %v471_v8, %v126_v37  ;;  %v244_v57 = vmul.f32 %v477_v15, %v227_v42  ;;  %v60_v19 = vld [vmem:[#allocation6 + $0x30] sm:$0xff]  ;;  %v130_v34 = vld [vmem:[#allocation7 + $0xc0] sm:$0xff] }
  0x40   :  { %v207_v56 = vadd.f32 %v191_v27, %v156_v45  ;;  %v108_v58 = vadd.f32 %v92_v48, %v58_v43  ;;  %v194_v59 = vmul.f32 %v475_v14, %v177_v44  ;;  %v158_v0 = vadd.f32 %v142_v41, %v107_v52  ;;  %v180_v27 = vld [vmem:[#allocation7 + $0x138] sm:$0xff]  ;;  %v80_v41 = vld [vmem:[#allocation7 + $0x48] sm:$0xff] }
  0x41   :  { %v257_v62 = vadd.f32 %v241_v26, %v206_v50  ;;  %v208_v63 = vadd.f32 %v192_v35, %v157_v51  ;;  %v93_v1 = vmul.f32 %v469_v7, %v76_v49  ;;  %v245_v9 = vmul.f32 %v477_v15, %v228_v54  ;;  %v61_v26 = vld [vmem:[#allocation6 + $0x38] sm:$0xff]  ;;  %v181_v35 = vld [vmem:[#allocation7 + $0x140] sm:$0xff]  ;;  %v182_v48 = vld [vmem:[#allocation7 + $0x148] sm:$0xff] }
  0x42   :  { %v258_v5 = vadd.f32 %v242_v33, %v207_v56  ;;  %v159_v6 = vadd.f32 %v143_v53, %v108_v58  ;;  %v144_v10 = vmul.f32 %v471_v8, %v127_v55  ;;  %v209_v16 = vadd.f32 %v193_v47, %v158_v0  ;;  %v231_v33 = vld [vmem:[#allocation7 + $0x1b8] sm:$0xff]  ;;  %v131_v47 = vld [vmem:[#allocation7 + $0xc8] sm:$0xff]  ;;  %v81_v54 = vld [vmem:[#allocation7 + $0x50] sm:$0xff] }
  0x43   :  { %273 = vst [vmem:[#allocation9] sm:$0xff] %v257_v62  ;;  %v259_v13 = vadd.f32 %v243_v46, %v208_v63  ;;  %v109_v17 = vadd.f32 %v93_v1, %v59_v60  ;;  %v195_v18 = vmul.f32 %v475_v14, %v178_v61  ;;  %v246_v23 = vmul.f32 %v477_v15, %v229_v2  ;;  %v232_v46 = vld [vmem:[#allocation7 + $0x1c0] sm:$0xff]  ;;  %v63_v53 = vld [vmem:[#allocation6 + $0x48] sm:$0xff]  ;;  %v132_v60 = vld [vmem:[#allocation7 + $0xd0] sm:$0xff] }
  0x44   :  { %274 = vst [vmem:[#allocation9 + $0x8] sm:$0xff] %v258_v5  ;;  %v210_v22 = vadd.f32 %v194_v59, %v159_v6  ;;  %v94_v24 = vmul.f32 %v469_v7, %v77_v3  ;;  %v145_v25 = vmul.f32 %v471_v8, %v128_v4  ;;  %v260_v29 = vadd.f32 %v244_v57, %v209_v16  ;;  %v233_v59 = vld [vmem:[#allocation7 + $0x1c8] sm:$0xff]  ;;  %v183_v61 = vld [vmem:[#allocation7 + $0x150] sm:$0xff] }
  0x45   :  { %275 = vst [vmem:[#allocation9 + $0x10] sm:$0xff] %v259_v13  ;;  %v160_v30 = vadd.f32 %v144_v10, %v109_v17  ;;  %v196_v31 = vmul.f32 %v475_v14, %v179_v11  ;;  %v95_v32 = vmul.f32 %v469_v7, %v78_v12  ;;  %v247_v38 = vmul.f32 %v477_v15, %v230_v20  ;;  %v64_v2 = vld [vmem:[#allocation6 + $0x50] sm:$0xff]  ;;  %v82_v10 = vld [vmem:[#allocation7 + $0x58] sm:$0xff]  ;;  %v83_v20 = vld [vmem:[#allocation7 + $0x60] sm:$0xff] }
  0x46   :  { %v261_v36 = vadd.f32 %v245_v9, %v210_v22  ;;  %v110_v37 = vadd.f32 %v94_v24, %v60_v19  ;;  %v146_v39 = vmul.f32 %v471_v8, %v129_v21  ;;  %276 = vst [vmem:[#allocation9 + $0x18] sm:$0xff] %v260_v29  ;;  %v197_v44 = vmul.f32 %v475_v14, %v180_v27  ;;  %v234_v3 = vld [vmem:[#allocation7 + $0x1d0] sm:$0xff]  ;;  %v133_v11 = vld [vmem:[#allocation7 + $0xd8] sm:$0xff]  ;;  %v185_v27 = vld [vmem:[#allocation7 + $0x160] sm:$0xff] }
  0x47   :  { %v211_v42 = vadd.f32 %v195_v18, %v160_v30  ;;  %v111_v43 = vadd.f32 %v95_v32, %v61_v26  ;;  %v96_v45 = vmul.f32 %v469_v7, %v79_v28  ;;  %v248_v50 = vmul.f32 %v477_v15, %v231_v33  ;;  %v184_v12 = vld [vmem:[#allocation7 + $0x158] sm:$0xff]  ;;  %v134_v26 = vld [vmem:[#allocation7 + $0xe0] sm:$0xff]  ;;  %v84_v33 = vld [vmem:[#allocation7 + $0x68] sm:$0xff] }
  0x48   :  { %277 = vst [vmem:[#allocation9 + $0x20] sm:$0xff] %v261_v36  ;;  %v161_v49 = vadd.f32 %v145_v25, %v110_v37  ;;  %v147_v51 = vmul.f32 %v471_v8, %v130_v34  ;;  %v198_v52 = vmul.f32 %v475_v14, %v181_v35  ;;  %v97_v58 = vmul.f32 %v469_v7, %v80_v41  ;;  %v65_v19 = vld [vmem:[#allocation6 + $0x58] sm:$0xff]  ;;  %v66_v32 = vld [vmem:[#allocation6 + $0x60] sm:$0xff] }
  0x49   :  { %v262_v55 = vadd.f32 %v246_v23, %v211_v42  ;;  %v162_v56 = vadd.f32 %v146_v39, %v111_v43  ;;  %v112_v57 = vadd.f32 %v96_v45, %v62_v40  ;;  %v249_v63 = vmul.f32 %v477_v15, %v232_v46  ;;  %v235_v25 = vld [vmem:[#allocation7 + $0x1d8] sm:$0xff]  ;;  %v135_v39 = vld [vmem:[#allocation7 + $0xe8] sm:$0xff]  ;;  %v85_v46 = vld [vmem:[#allocation7 + $0x70] sm:$0xff] }
  0x4a   :  { %v212_v62 = vadd.f32 %v196_v31, %v161_v49  ;;  %v148_v0 = vmul.f32 %v471_v8, %v131_v47  ;;  %v199_v1 = vmul.f32 %v475_v14, %v182_v48  ;;  %v113_v6 = vadd.f32 %v97_v58, %v63_v53  ;;  %v186_v40 = vld [vmem:[#allocation7 + $0x168] sm:$0xff]  ;;  %v187_v53 = vld [vmem:[#allocation7 + $0x170] sm:$0xff] }
  0x4b   :  { %278 = vst [vmem:[#allocation9 + $0x28] sm:$0xff] %v262_v55  ;;  %v213_v4 = vadd.f32 %v197_v44, %v162_v56  ;;  %v163_v5 = vadd.f32 %v147_v51, %v112_v57  ;;  %v98_v9 = vmul.f32 %v469_v7, %v81_v54  ;;  %v250_v16 = vmul.f32 %v477_v15, %v233_v59  ;;  %v67_v45 = vld [vmem:[#allocation6 + $0x68] sm:$0xff]  ;;  %v68_v58 = vld [vmem:[#allocation6 + $0x70] sm:$0xff]  ;;  %v86_v59 = vld [vmem:[#allocation7 + $0x78] sm:$0xff] }
  0x4c   :  { %v263_v13 = vadd.f32 %v247_v38, %v212_v62  ;;  %v149_v17 = vmul.f32 %v471_v8, %v132_v60  ;;  %v200_v18 = vmul.f32 %v475_v14, %v183_v61  ;;  %v164_v23 = vadd.f32 %v148_v0, %v113_v6  ;;  %v236_v38 = vld [vmem:[#allocation7 + $0x1e0] sm:$0xff]  ;;  %v237_v51 = vld [vmem:[#allocation7 + $0x1e8] sm:$0xff]  ;;  %v238_v0 = vld [vmem:[#allocation7 + $0x1f0] sm:$0xff] }
  0x4d   :  { %v264_v21 = vadd.f32 %v248_v50, %v213_v4  ;;  %v214_v22 = vadd.f32 %v198_v52, %v163_v5  ;;  %v114_v24 = vadd.f32 %v98_v9, %v64_v2  ;;  %v251_v28 = vmul.f32 %v477_v15, %v234_v3  ;;  %v136_v52 = vld [vmem:[#allocation7 + $0xf0] sm:$0xff]  ;;  %v188_v2 = vld [vmem:[#allocation7 + $0x178] sm:$0xff] }
  0x4e   :  { %279 = vst [vmem:[#allocation9 + $0x30] sm:$0xff] %v263_v13  ;;  %v99_v29 = vmul.f32 %v469_v7, %v82_v10  ;;  %v150_v30 = vmul.f32 %v471_v8, %v133_v11  ;;  %v201_v31 = vmul.f32 %v475_v14, %v184_v12  ;;  %v215_v35 = vadd.f32 %v199_v1, %v164_v23  ;;  %v137_v1 = vld [vmem:[#allocation7 + $0xf8] sm:$0xff] }
  0x4f   :  { %280 = vst [vmem:[#allocation9 + $0x38] sm:$0xff] %v264_v21  ;;  %v265_v34 = vadd.f32 %v249_v63, %v214_v22  ;;  %v165_v36 = vadd.f32 %v149_v17, %v114_v24  ;;  %v100_v37 = vmul.f32 %v469_v7, %v83_v20  ;;  %v252_v42 = vmul.f32 %v477_v15, %v235_v25  ;;  %v69_v9 = vld [vmem:[#allocation6 + $0x78] sm:$0xff] }
  0x50   :  { %v115_v41 = vadd.f32 %v99_v29, %v65_v19  ;;  %v151_v43 = vmul.f32 %v471_v8, %v134_v26  ;;  %v202_v44 = vmul.f32 %v475_v14, %v185_v27  ;;  %v266_v47 = vadd.f32 %v250_v16, %v215_v35  ;;  %v239_v20 = vld [vmem:[#allocation7 + $0x1f8] sm:$0xff] }
  0x51   :  { %281 = vst [vmem:[#allocation9 + $0x40] sm:$0xff] %v265_v34  ;;  %v216_v48 = vadd.f32 %v200_v18, %v165_v36  ;;  %v116_v49 = vadd.f32 %v100_v37, %v66_v32  ;;  %v101_v50 = vmul.f32 %v469_v7, %v84_v33  ;;  %v253_v55 = vmul.f32 %v477_v15, %v236_v38 }
  0x52   :  { %v166_v54 = vadd.f32 %v150_v30, %v115_v41  ;;  %v152_v56 = vmul.f32 %v471_v8, %v135_v39  ;;  %v203_v57 = vmul.f32 %v475_v14, %v186_v40  ;;  %282 = vst [vmem:[#allocation9 + $0x48] sm:$0xff] %v266_v47  ;;  %v102_v63 = vmul.f32 %v469_v7, %v85_v46 }
  0x53   :  { %v267_v60 = vadd.f32 %v251_v28, %v216_v48  ;;  %v167_v61 = vadd.f32 %v151_v43, %v116_v49  ;;  %v117_v62 = vadd.f32 %v101_v50, %v67_v45  ;;  %v254_v4 = vmul.f32 %v477_v15, %v237_v51 }
  0x54   :  { %v217_v3 = vadd.f32 %v201_v31, %v166_v54  ;;  %v153_v5 = vmul.f32 %v471_v8, %v136_v52  ;;  %v204_v6 = vmul.f32 %v475_v14, %v187_v53  ;;  %v118_v12 = vadd.f32 %v102_v63, %v68_v58 }
  0x55   :  { %283 = vst [vmem:[#allocation9 + $0x50] sm:$0xff] %v267_v60  ;;  %v218_v10 = vadd.f32 %v202_v44, %v167_v61  ;;  %v168_v11 = vadd.f32 %v152_v56, %v117_v62  ;;  %v103_v13 = vmul.f32 %v469_v7, %v86_v59  ;;  %v255_v17 = vmul.f32 %v477_v15, %v238_v0 }
  0x56   :  { %v268_v16 = vadd.f32 %v252_v42, %v217_v3  ;;  %v154_v18 = vmul.f32 %v471_v8, %v137_v1  ;;  %v205_v19 = vmul.f32 %v475_v14, %v188_v2  ;;  %v169_v23 = vadd.f32 %v153_v5, %v118_v12 }
  0x57   :  { %v269_v21 = vadd.f32 %v253_v55, %v218_v10  ;;  %v219_v22 = vadd.f32 %v203_v57, %v168_v11  ;;  %v119_v24 = vadd.f32 %v103_v13, %v69_v9  ;;  %v256_v28 = vmul.f32 %v477_v15, %v239_v20 }
  0x58   :  { %284 = vst [vmem:[#allocation9 + $0x58] sm:$0xff] %v268_v16  ;;  %v220_v26 = vadd.f32 %v204_v6, %v169_v23 }
  0x59   :  { %285 = vst [vmem:[#allocation9 + $0x60] sm:$0xff] %v269_v21  ;;  %v270_v25 = vadd.f32 %v254_v4, %v219_v22  ;;  %v170_v27 = vadd.f32 %v154_v18, %v119_v24 }
  0x5a   :  { %v271_v7 = vadd.f32 %v255_v17, %v220_v26 }
  0x5b   :  { %286 = vst [vmem:[#allocation9 + $0x68] sm:$0xff] %v270_v25  ;;  %v221_v29 = vadd.f32 %v205_v19, %v170_v27 }
  0x5c   :  { %287 = vst [vmem:[#allocation9 + $0x70] sm:$0xff] %v271_v7 }
  0x5d   :  { %v272_v8 = vadd.f32 %v256_v28, %v221_v29 }
  0x5f   :  { %288 = vst [vmem:[#allocation9 + $0x78] sm:$0xff] %v272_v8 }
  0x60   :  { %382 = shalt.err (!%p379_p9)
}
  0x61   :  { %s383_s27 = scalar_lea.hbm %s559_s3, 2048 }
  0x62   :  { %p384_p10 = scmp.ne.s32.totalorder %s559_s3, %s383_s27  ;;  %p387_p11 = scmp.lt.u32.totalorder %s383_s27, %s559_s3 }
  0x64   :  { %p389_p12 = pnand %p387_p11, %p384_p10 }
  0x66   :  { %392 = shalt.err (!%p389_p12)
}
  0x67   :  { %300 = dma.vmem_to_hbm [thread:$0]  %s295_s23, 2048, %s559_s3, [#allocation4], %s403_s0, %s403_s0, %s404_s5  }
  0x68   :  { %399 = dma.done.wait [#allocation4], 2048  }
  0x69   :  { %400 = vsyncadd [#allocation4], 4294965248 }
  0x6a   :  { %304 = vsyncpa [#allocation3], 1 }
  0x6b   :  { %305 = vsyncpa [#allocation8], 1 }
  0x6c   :  { %306 = vsyncpa [#allocation4], 1 }
  0x6d   :  { %307 = vsyncpa [#allocation5], 1 }

</bundles_post_ra>
